<compile_context>
chip_gen: v7x
topology: tpu7x:2x2x1
jax: 0.10.0
libtpu: 0.0.40
codegen_flags: <defaults>
</compile_context>

<pallas_src>
import functools

import jax
import jax.numpy as jnp
from jax.experimental import pallas as pl
from jax.experimental.pallas import tpu as pltpu


def _round_up(x, m):
    return ((x + m - 1) // m) * m


def _cdiv(a, b):
    return -(-a // b)


def _tpu_info():
    try:
        return pltpu.get_tpu_info()
    except Exception:
        return None


def _vmem_limit_bytes():
    """Generation-aware VMEM request: ~48 MiB on v7x (64 MiB/TC), 64 MiB on v5e/v6e."""
    cap = 64 * 1024 * 1024
    info = _tpu_info()
    if info is not None:
        cap = int(getattr(info, "vmem_capacity_bytes", cap) or cap)
    return int(min(cap * 3 // 4, 64 * 1024 * 1024))


def _num_tensorcores():
    """TensorCore count (v7x: 2). Conservatively 1 if the field is unavailable."""
    info = _tpu_info()
    if info is None:
        return 1
    for attr in ("num_cores", "core_count", "tensorcore_count", "num_tensorcores"):
        v = getattr(info, attr, None)
        if isinstance(v, int) and 1 <= v <= 16:
            return v
    return 1


def _energy_loss_kernel(kcnt_ref, ucnt_ref, logits_ref, y_ref, part_ref, *,
                        alpha, m_in, m_out, n_valid, tile_n, tiles_per_split):
    p = pl.program_id(0)              # batch split (one per TensorCore on v7x)
    t = pl.program_id(1)              # streaming reduction over this split's tiles
    blk = p * tiles_per_split + t     # global row-block index

    # Zero this split's two accumulators on its first tile.
    @pl.when(t == 0)
    def _():
        part_ref[0, 0, 0] = jnp.float32(0.0)
        part_ref[0, 0, 1] = jnp.float32(0.0)

    tile_known = kcnt_ref[blk]        # SMEM scalar loads (prefetched per-tile counts)
    tile_unknown = ucnt_ref[blk]

    tn, c = logits_ref.shape
    y = y_ref[...]                    # (tile_n, 1) int32
    x = logits_ref[...]               # native-dtype tile (no wrapper-side cast)

    ragged = (n_valid % tile_n) != 0  # compile-time: does any block have stale rows?
    if ragged:
        # Mask stale rows of the ragged last block BEFORE max/exp so garbage
        # bits can't inject NaN/Inf (NaN * 0 == NaN would survive masking).
        base = blk * tile_n
        row = jax.lax.broadcasted_iota(jnp.int32, (tn, 1), 0) + base
        valid = row < n_valid
        x = jnp.where(valid, x, 0)

    logits = x.astype(jnp.float32)    # in-kernel upcast (VMEM temp only)

    # ---- IN samples: CE + alpha * relu(logsumexp - m_in)^2 (skipped if none) ----
    @pl.when(tile_known > 0)
    def _():
        known = y >= 0
        if ragged:
            known = jnp.logical_and(known, valid)
        known_f = known.astype(jnp.float32)                       # (tile_n, 1)
        row_max = jnp.max(logits, axis=1, keepdims=True)
        lse = row_max + jnp.log(
            jnp.sum(jnp.exp(logits - row_max), axis=1, keepdims=True))
        lane = jax.lax.broadcasted_iota(jnp.int32, (tn, c), 1)
        picked = jnp.sum(jnp.where(lane == y, logits, 0.0), axis=1, keepdims=True)
        ce_i = lse - picked
        e_in = jnp.maximum(lse - m_in, 0.0)
        # alpha folded in-kernel -> only one known-masked sum per tile.
        part_ref[0, 0, 0] += jnp.sum((ce_i + alpha * (e_in * e_in)) * known_f)

    # ---- OOD samples: relu(logsumexp(m_out - logits))^2 (skipped if none) -------
    @pl.when(tile_unknown > 0)
    def _():
        unknown = y < 0
        if ragged:
            unknown = jnp.logical_and(unknown, valid)
        unknown_f = unknown.astype(jnp.float32)
        # Stable row_min shift; never materializes (m_out - logits).
        row_min = jnp.min(logits, axis=1, keepdims=True)
        lse_out = (m_out - row_min) + jnp.log(
            jnp.sum(jnp.exp(row_min - logits), axis=1, keepdims=True))
        e_out = jnp.maximum(lse_out, 0.0)
        part_ref[0, 0, 1] += jnp.sum((e_out * e_out) * unknown_f)


def energy_regularized_loss(logits, y, alpha=1.0, margin_in=1.0, margin_out=1.0):
    """Pallas wrapper. logits: [N, C] float (any float dtype), y: [N] int (y < 0 => OOD)."""
    n, c = logits.shape
    y2 = y.reshape(n, 1).astype(jnp.int32)
    itemsize = int(jnp.dtype(logits.dtype).itemsize)

    vmem_limit = _vmem_limit_bytes()

    # Tile rows from the actual live set: 2 double-buffered native-dtype input
    # rows, ~3 f32 row temporaries (masked/upcast, shifted, exp), plus the two
    # lane-padded (tile_n, 1) int32 y buffers.  Clamp to [8, 1024] rows.
    per_row = c * (2 * itemsize + 3 * 4) + 2 * 128 * 4
    rows = (vmem_limit - (2 << 20)) // max(per_row, 1)
    tile_n = int(max(8, min(1024, (rows // 8) * 8)))
    tile_n = int(min(tile_n, _round_up(max(n, 1), 8)))

    nb = _cdiv(n, tile_n)                         # real row-blocks (no logits pad!)
    cores = _num_tensorcores()
    num_splits = cores if (cores > 1 and nb >= cores) else 1
    tiles_per_split = _cdiv(nb, num_splits)
    grid_blocks = num_splits * tiles_per_split    # >= nb; overshoot blocks are skipped

    # Per-tile known/unknown counts (scalar-prefetched to SMEM): lets the kernel
    # skip the IN or OOD logsumexp pass entirely on homogeneous tiles, and skip
    # overshoot blocks (count == 0) when nb doesn't divide evenly across cores.
    known_vec = y2[:, 0] >= 0
    pad_rows = nb * tile_n - n
    known_pad = jnp.pad(known_vec, (0, pad_rows))
    valid_pad = jnp.pad(jnp.ones((n,), dtype=bool), (0, pad_rows))
    kcnt = jnp.sum(known_pad.reshape(nb, tile_n), axis=1, dtype=jnp.int32)
    ucnt = jnp.sum((valid_pad & (~known_pad)).reshape(nb, tile_n), axis=1,
                   dtype=jnp.int32)
    if grid_blocks > nb:
        kcnt = jnp.pad(kcnt, (0, grid_blocks - nb))
        ucnt = jnp.pad(ucnt, (0, grid_blocks - nb))
    n_known = jnp.sum(kcnt)
    n_unknown = jnp.sum(ucnt)

    if grid_blocks == nb:
        def _row_block(p, t):
            return p * tiles_per_split + t
    else:
        def _row_block(p, t):
            return jnp.minimum(p * tiles_per_split + t, nb - 1)

    kernel = functools.partial(
        _energy_loss_kernel,
        alpha=float(alpha),
        m_in=float(margin_in),
        m_out=float(margin_out),
        n_valid=int(n),
        tile_n=int(tile_n),
        tiles_per_split=int(tiles_per_split),
    )

    if num_splits > 1:
        dim_sem = (pltpu.CORE_PARALLEL, pltpu.ARBITRARY)   # v7x: one split per TC
    else:
        dim_sem = ("arbitrary", "arbitrary")

    partials = pl.pallas_call(
        kernel,
        out_shape=jax.ShapeDtypeStruct((num_splits, 1, 2), jnp.float32),
        grid_spec=pltpu.PrefetchScalarGridSpec(
            num_scalar_prefetch=2,
            grid=(num_splits, tiles_per_split),
            in_specs=[
                pl.BlockSpec((tile_n, c), lambda p, t, kr, ur: (_row_block(p, t), 0)),
                pl.BlockSpec((tile_n, 1), lambda p, t, kr, ur: (_row_block(p, t), 0)),
            ],
            out_specs=pl.BlockSpec((1, 1, 2), lambda p, t, kr, ur: (p, 0, 0),
                                   memory_space=pltpu.MemorySpace.SMEM),
        ),
        compiler_params=pltpu.CompilerParams(
            dimension_semantics=dim_sem,
            vmem_limit_bytes=vmem_limit,
        ),
        cost_estimate=pl.CostEstimate(
            flops=8 * n * c,
            transcendentals=n * c,
            bytes_accessed=n * (c * itemsize + 4) + 2 * grid_blocks * 4 + num_splits * 8,
        ),
    )(kcnt, ucnt, logits, y2)

    # Tiny finalize in plain JAX. Empty groups contribute 0 (pytorch_ood's
    # CrossEntropyLoss ignores unknown labels; see module docstring).
    s = jnp.sum(partials, axis=(0, 1))                       # (2,)
    nk = n_known.astype(jnp.float32)
    nu = n_unknown.astype(jnp.float32)
    known_term = jnp.where(nk > 0, s[0] / jnp.maximum(nk, 1.0), 0.0)
    unknown_term = jnp.where(nu > 0, s[1] / jnp.maximum(nu, 1.0), 0.0)
    return known_term + float(alpha) * unknown_term


def _reference_loss(logits, y, alpha=1.0, margin_in=1.0, margin_out=1.0):
    """Pure-JAX reference mirroring the PyTorch module."""
    logits = logits.astype(jnp.float32)
    known = y >= 0
    lse = jax.nn.logsumexp(logits, axis=1)
    picked = jnp.take_along_axis(logits, jnp.maximum(y, 0)[:, None], axis=1)[:, 0]
    ce_i = lse - picked
    n_known = jnp.sum(known)
    n_unknown = jnp.sum(~known)
    ce = jnp.where(n_known > 0,
                   jnp.sum(jnp.where(known, ce_i, 0.0)) / jnp.maximum(n_known, 1),
                   0.0)
    e_in_i = jnp.maximum(lse - margin_in, 0.0) ** 2
    e_in = jnp.where(n_known > 0,
                     jnp.sum(jnp.where(known, e_in_i, 0.0)) / jnp.maximum(n_known, 1),
                     0.0)
    lse_out = jax.nn.logsumexp(margin_out - logits, axis=1)
    e_out_i = jnp.maximum(lse_out, 0.0) ** 2
    e_out = jnp.where(n_unknown > 0,
                      jnp.sum(jnp.where(~known, e_out_i, 0.0)) / jnp.maximum(n_unknown, 1),
                      0.0)
    return ce + alpha * (e_in + e_out)


if __name__ == "__main__":
    key = jax.random.PRNGKey(0)

    def _check(n, c, n_id, case_key):
        k_logits, k_labels = jax.random.split(case_key)
        logits = jax.random.normal(k_logits, (n, c), dtype=jnp.float32) * 2.0
        labels_in = jax.random.randint(k_labels, (n_id,), 0, c, dtype=jnp.int32)
        labels_out = -jnp.ones((n - n_id,), dtype=jnp.int32)
        y = jnp.concatenate([labels_in, labels_out], axis=0)
        got = jax.block_until_ready(
            energy_regularized_loss(logits, y, alpha=1.0, margin_in=1.0, margin_out=1.0))
        want = _reference_loss(logits, y, alpha=1.0, margin_in=1.0, margin_out=1.0)
        assert jnp.allclose(got, want, rtol=1e-5, atol=1e-5), (n, c, got, want)

    k1, k2, k3 = jax.random.split(key, 3)
    _check(8, 32, 4, k1)    # aligned batch, mixed ID/OOD tile
    _check(10, 32, 5, k2)   # ragged last block: in-kernel masking, no logits pad
    _check(8, 32, 8, k3)    # all ID: OOD branch skipped per-tile, e_out == 0
    print("KERNEL_OK")
</pallas_src>

<mosaic_0001>
module attributes {stable_mosaic.version = 11 : i64} {
  func.func @_energy_loss_kernel(%arg0: i32, %arg1: i32, %arg2: memref<1xi32, #tpu.memory_space<smem>>, %arg3: memref<1xi32, #tpu.memory_space<smem>>, %arg4: memref<8x32xf32, #tpu.memory_space<vmem>>, %arg5: memref<8x1xi32, #tpu.memory_space<vmem>>, %arg6: memref<1x1x2xf32, #tpu.memory_space<smem>>) attributes {dimension_semantics = [#tpu.dimension_semantics<arbitrary>, #tpu.dimension_semantics<arbitrary>], iteration_bounds = array<i64: 1, 1>, scalar_prefetch = 2 : i64, scratch_operands = 0 : i64, tpu.core_type = #tpu.core_type<tc>, window_params = [{transform_indices = @transform_0, window_bounds = array<i64: 8, 32>}, {transform_indices = @transform_1, window_bounds = array<i64: 8, 1>}, {transform_indices = @transform_2, window_bounds = array<i64: 1, 1, 2>}]} {
    %c1_i32 = arith.constant 1 : i32
    %0 = arith.muli %arg0, %c1_i32 : i32
    %1 = arith.addi %0, %arg1 : i32
    %c0_i32 = arith.constant 0 : i32
    %2 = arith.cmpi eq, %arg1, %c0_i32 : i32
    %3 = arith.extui %2 : i1 to i32
    %c0_i32_0 = arith.constant 0 : i32
    %4 = arith.cmpi ne, %3, %c0_i32_0 : i32
    scf.if %4 {
      %cst = arith.constant 0.000000e+00 : f32
      %c0_8 = arith.constant 0 : index
      %c0_9 = arith.constant 0 : index
      %c0_10 = arith.constant 0 : index
      %17 = memref.load %arg6[%c0_8, %c0_9, %c0_10] : memref<1x1x2xf32, #tpu.memory_space<smem>>
      memref.store %cst, %arg6[%c0_8, %c0_9, %c0_10] : memref<1x1x2xf32, #tpu.memory_space<smem>>
      %cst_11 = arith.constant 0.000000e+00 : f32
      %c0_12 = arith.constant 0 : index
      %c0_13 = arith.constant 0 : index
      %c1 = arith.constant 1 : index
      %18 = memref.load %arg6[%c0_12, %c0_13, %c1] : memref<1x1x2xf32, #tpu.memory_space<smem>>
      memref.store %cst_11, %arg6[%c0_12, %c0_13, %c1] : memref<1x1x2xf32, #tpu.memory_space<smem>>
    } else {
    }
    %5 = arith.index_cast %1 : i32 to index
    %6 = memref.load %arg2[%5] : memref<1xi32, #tpu.memory_space<smem>>
    %7 = arith.index_cast %1 : i32 to index
    %8 = memref.load %arg3[%7] : memref<1xi32, #tpu.memory_space<smem>>
    %c0 = arith.constant 0 : index
    %c0_1 = arith.constant 0 : index
    %9 = vector.load %arg5[%c0, %c0_1] : memref<8x1xi32, #tpu.memory_space<vmem>>, vector<8x1xi32>
    %c0_2 = arith.constant 0 : index
    %c0_3 = arith.constant 0 : index
    %10 = vector.load %arg4[%c0_2, %c0_3] : memref<8x32xf32, #tpu.memory_space<vmem>>, vector<8x32xf32>
    %c0_i32_4 = arith.constant 0 : i32
    %11 = arith.cmpi sgt, %6, %c0_i32_4 : i32
    %12 = arith.extui %11 : i1 to i32
    %c0_i32_5 = arith.constant 0 : i32
    %13 = arith.cmpi ne, %12, %c0_i32_5 : i32
    scf.if %13 {
      %c0_i32_8 = arith.constant 0 : i32
      %17 = vector.broadcast %c0_i32_8 : i32 to vector<8x1xi32>
      %18 = arith.cmpi sge, %9, %17 : vector<8x1xi32>
      %19 = arith.extui %18 : vector<8x1xi1> to vector<8x1xi32>
      %20 = arith.sitofp %19 : vector<8x1xi32> to vector<8x1xf32>
      %cst = arith.constant dense<0xFF800000> : vector<8xf32>
      %21 = vector.multi_reduction <maximumf>, %10, %cst [1] : vector<8x32xf32> to vector<8xf32>
      %22 = vector.shape_cast %21 : vector<8xf32> to vector<8x1xf32>
      %23 = vector.broadcast %22 : vector<8x1xf32> to vector<8x32xf32>
      %24 = arith.subf %10, %23 : vector<8x32xf32>
      %25 = math.exp %24 : vector<8x32xf32>
      %cst_9 = arith.constant dense<0.000000e+00> : vector<8xf32>
      %26 = vector.multi_reduction <add>, %25, %cst_9 [1] : vector<8x32xf32> to vector<8xf32>
      %27 = vector.shape_cast %26 : vector<8xf32> to vector<8x1xf32>
      %28 = math.log %27 : vector<8x1xf32>
      %29 = arith.addf %22, %28 : vector<8x1xf32>
      %30 = tpu.iota {dimensions = array<i32: 1>} : vector<8x32xi32>
      %31 = vector.broadcast %9 : vector<8x1xi32> to vector<8x32xi32>
      %32 = arith.cmpi eq, %30, %31 : vector<8x32xi32>
      %cst_10 = arith.constant 0.000000e+00 : f32
      %33 = vector.broadcast %cst_10 : f32 to vector<8x32xf32>
      %34 = arith.select %32, %10, %33 : vector<8x32xi1>, vector<8x32xf32>
      %cst_11 = arith.constant dense<0.000000e+00> : vector<8xf32>
      %35 = vector.multi_reduction <add>, %34, %cst_11 [1] : vector<8x32xf32> to vector<8xf32>
      %36 = vector.shape_cast %35 : vector<8xf32> to vector<8x1xf32>
      %37 = arith.subf %29, %36 : vector<8x1xf32>
      %cst_12 = arith.constant 1.000000e+00 : f32
      %38 = vector.broadcast %cst_12 : f32 to vector<8x1xf32>
      %39 = arith.subf %29, %38 : vector<8x1xf32>
      %cst_13 = arith.constant 0.000000e+00 : f32
      %40 = vector.broadcast %cst_13 : f32 to vector<8x1xf32>
      %41 = arith.maximumf %39, %40 : vector<8x1xf32>
      %c0_14 = arith.constant 0 : index
      %c0_15 = arith.constant 0 : index
      %c0_16 = arith.constant 0 : index
      %42 = memref.load %arg6[%c0_14, %c0_15, %c0_16] : memref<1x1x2xf32, #tpu.memory_space<smem>>
      %43 = arith.mulf %41, %41 : vector<8x1xf32>
      %cst_17 = arith.constant 1.000000e+00 : f32
      %44 = vector.broadcast %cst_17 : f32 to vector<8x1xf32>
      %45 = arith.mulf %44, %43 : vector<8x1xf32>
      %46 = arith.addf %37, %45 : vector<8x1xf32>
      %47 = arith.mulf %46, %20 : vector<8x1xf32>
      %48 = vector.shape_cast %47 : vector<8x1xf32> to vector<1x8x1xf32>
      %cst_18 = arith.constant dense<0.000000e+00> : vector<1xf32>
      %49 = vector.multi_reduction <add>, %48, %cst_18 [1, 2] : vector<1x8x1xf32> to vector<1xf32>
      %50 = vector.shape_cast %49 : vector<1xf32> to vector<1x1x1xf32>
      %51 = vector.extract %50[0, 0, 0] : f32 from vector<1x1x1xf32>
      %52 = arith.addf %42, %51 : f32
      %c0_19 = arith.constant 0 : index
      %c0_20 = arith.constant 0 : index
      %c0_21 = arith.constant 0 : index
      %53 = memref.load %arg6[%c0_19, %c0_20, %c0_21] : memref<1x1x2xf32, #tpu.memory_space<smem>>
      memref.store %52, %arg6[%c0_19, %c0_20, %c0_21] : memref<1x1x2xf32, #tpu.memory_space<smem>>
    } else {
    }
    %c0_i32_6 = arith.constant 0 : i32
    %14 = arith.cmpi sgt, %8, %c0_i32_6 : i32
    %15 = arith.extui %14 : i1 to i32
    %c0_i32_7 = arith.constant 0 : i32
    %16 = arith.cmpi ne, %15, %c0_i32_7 : i32
    scf.if %16 {
      %c0_i32_8 = arith.constant 0 : i32
      %17 = vector.broadcast %c0_i32_8 : i32 to vector<8x1xi32>
      %18 = arith.cmpi slt, %9, %17 : vector<8x1xi32>
      %19 = arith.extui %18 : vector<8x1xi1> to vector<8x1xi32>
      %20 = arith.sitofp %19 : vector<8x1xi32> to vector<8x1xf32>
      %cst = arith.constant dense<0x7F800000> : vector<8xf32>
      %21 = vector.multi_reduction <minimumf>, %10, %cst [1] : vector<8x32xf32> to vector<8xf32>
      %22 = vector.shape_cast %21 : vector<8xf32> to vector<8x1xf32>
      %cst_9 = arith.constant 1.000000e+00 : f32
      %23 = vector.broadcast %cst_9 : f32 to vector<8x1xf32>
      %24 = arith.subf %23, %22 : vector<8x1xf32>
      %25 = vector.broadcast %22 : vector<8x1xf32> to vector<8x32xf32>
      %26 = arith.subf %25, %10 : vector<8x32xf32>
      %27 = math.exp %26 : vector<8x32xf32>
      %cst_10 = arith.constant dense<0.000000e+00> : vector<8xf32>
      %28 = vector.multi_reduction <add>, %27, %cst_10 [1] : vector<8x32xf32> to vector<8xf32>
      %29 = vector.shape_cast %28 : vector<8xf32> to vector<8x1xf32>
      %30 = math.log %29 : vector<8x1xf32>
      %31 = arith.addf %24, %30 : vector<8x1xf32>
      %cst_11 = arith.constant 0.000000e+00 : f32
      %32 = vector.broadcast %cst_11 : f32 to vector<8x1xf32>
      %33 = arith.maximumf %31, %32 : vector<8x1xf32>
      %c0_12 = arith.constant 0 : index
      %c0_13 = arith.constant 0 : index
      %c1 = arith.constant 1 : index
      %34 = memref.load %arg6[%c0_12, %c0_13, %c1] : memref<1x1x2xf32, #tpu.memory_space<smem>>
      %35 = arith.mulf %33, %33 : vector<8x1xf32>
      %36 = arith.mulf %35, %20 : vector<8x1xf32>
      %37 = vector.shape_cast %36 : vector<8x1xf32> to vector<1x8x1xf32>
      %cst_14 = arith.constant dense<0.000000e+00> : vector<1xf32>
      %38 = vector.multi_reduction <add>, %37, %cst_14 [1, 2] : vector<1x8x1xf32> to vector<1xf32>
      %39 = vector.shape_cast %38 : vector<1xf32> to vector<1x1x1xf32>
      %40 = vector.extract %39[0, 0, 0] : f32 from vector<1x1x1xf32>
      %41 = arith.addf %34, %40 : f32
      %c0_15 = arith.constant 0 : index
      %c0_16 = arith.constant 0 : index
      %c1_17 = arith.constant 1 : index
      %42 = memref.load %arg6[%c0_15, %c0_16, %c1_17] : memref<1x1x2xf32, #tpu.memory_space<smem>>
      memref.store %41, %arg6[%c0_15, %c0_16, %c1_17] : memref<1x1x2xf32, #tpu.memory_space<smem>>
    } else {
    }
    return
  }
  func.func @transform_0(%arg0: i32, %arg1: i32, %arg2: memref<1xi32, #tpu.memory_space<smem>>, %arg3: memref<1xi32, #tpu.memory_space<smem>>) -> (i32, i32) {
    %c1_i32 = arith.constant 1 : i32
    %0 = arith.muli %arg0, %c1_i32 : i32
    %1 = arith.addi %0, %arg1 : i32
    %c0_i32 = arith.constant 0 : i32
    %c0_i32_0 = arith.constant 0 : i32
    return %1, %c0_i32 : i32, i32
  }
  func.func @transform_1(%arg0: i32, %arg1: i32, %arg2: memref<1xi32, #tpu.memory_space<smem>>, %arg3: memref<1xi32, #tpu.memory_space<smem>>) -> (i32, i32) {
    %c1_i32 = arith.constant 1 : i32
    %0 = arith.muli %arg0, %c1_i32 : i32
    %1 = arith.addi %0, %arg1 : i32
    %c0_i32 = arith.constant 0 : i32
    %c0_i32_0 = arith.constant 0 : i32
    return %1, %c0_i32 : i32, i32
  }
  func.func @transform_2(%arg0: i32, %arg1: i32, %arg2: memref<1xi32, #tpu.memory_space<smem>>, %arg3: memref<1xi32, #tpu.memory_space<smem>>) -> (i32, i32, i32) {
    %c0_i32 = arith.constant 0 : i32
    %c0_i32_0 = arith.constant 0 : i32
    %c0_i32_1 = arith.constant 0 : i32
    return %arg0, %c0_i32, %c0_i32_0 : i32, i32, i32
  }
}

</mosaic_0001>

<bundles_post_ra>
// kernel: tpu_custom_call.1
= control target key start
LH: loop header
LB: loop body
LE: loop exit
PB: predicated region body
PF: predicated region fallthrough
CT: control target
= control target key end

     0   :  { %11 = vsyncpa [#allocation6], 0  ;;  %s214_s19 = smov 0.0   ;;  %s283_s0 = inlined_call_operand.<no memory space> [shape: s32[1], index: 0, kind: input, shape index: {}]   ;;  %s284_s1 = inlined_call_operand.<no memory space> [shape: s32[1], index: 1, kind: input, shape index: {}]   ;;  %s285_s2 = inlined_call_operand.vmem [shape: f32[8,32], index: 2, kind: input, shape index: {}]   ;;  %s286_s3 = inlined_call_operand.vmem [shape: s32[8,1], index: 3, kind: input, shape index: {}]   ;;  %s287_s4 = inlined_call_operand.hbm [shape: f32[1,1,2], index: 4, kind: output, shape index: {}]  }
   0x1   :  { %v247_v0 = vld [vmem:[%s286_s3] sm:$0xff]  ;;  %56 = sst [smem:[#allocation5]] %s214_s19  ;;  %p178_p0 = scmp.le.s32.totalorder %s283_s0, 0 }
   0x2   :  { %v252_v1 = vld [vmem:[%s285_s2] sm:$0xff]  ;;  %58 = sst [smem:[#allocation5 + $0x1]] %s214_s19  ;;  %vm70_vm0 = vcmask (!%p178_p0), 261120   ;;  %v215_v3 = vmov (!%p178_p0), 0   ;;  %v83_v7 = vlaneseq (!%p178_p0)  ;;  %vm67_vm2 = vcmp.ge.s32.totalorder (!%p178_p0), %v247_v0, 0  ;;  %s96_s0 = sld [smem:[#allocation5]] (!%p178_p0) }
   0x3   :  { %66 = sbr.rel (%p178_p0) target bundleno = 537 (0x219), region = 17  ;;  %v71_v2 = vsel (!%p178_p0), %vm70_vm0, %v252_v1, -inf  ;;  %193 = vset.pattern.permute.xlu0 (!%p178_p0), %v215_v3  ;;  %v216_v23 = vmov (!%p178_p0), 0.0   ;;  %vm100_vm3 = vcmask (!%p178_p0), 7168  }
   0x4   :  { %72 = vmax.xlane.f32.xlu0 (!%p178_p0), %v71_v2  ;;  %v84_v8 = vand.u32 (!%p178_p0), 127, %v83_v7  ;;  %v179_v24 = vsel (!%p178_p0), %vm67_vm2, 1.0, %v216_v23 }
  0x1a   :  { %86 = vperm.xlu0 %193, %v247_v0  }
  0x91   :  { %v73_v4 = vpop.xlane.xlu0 %72 }
  0x92   :  { %v74_v5 = vsub.f32 %v252_v1, %v73_v4 }
  0x94   :  { %v75_v6 = vmul.f32 1.442695, %v74_v5 }
  0x96   :  { %194 = vpow2.f32 %v75_v6 }
  0x99   :  { %v87_v9 = vpop.permute.xlu0 %86 }
  0x9a   :  { %vm88_vm1 = vcmp.eq.s32.totalorder %v84_v8, %v87_v9 }
  0x9b   :  { %v89_v11 = vsel %vm88_vm1, %v252_v1, 0.0 }
  0x9c   :  { %v90_v13 = vsel %vm70_vm0, %v89_v11, 0.0 }
  0xa0   :  { %v195_v10 = vpop.eup %194 }
  0xa1   :  { %v77_v12 = vsel %vm70_vm0, %v195_v10, 0.0 }
  0xa2   :  { %78 = vadd.xlane.f32.xlu1 %v77_v12 }
  0xa6   :  { %91 = vadd.xlane.f32.xlu1 %v90_v13 }
 0x12f   :  { %v79_v14 = vpop.xlane.xlu1 %78 }
 0x130   :  { %196 = vlog2.f32 %v79_v14 }
 0x133   :  { %v92_v19 = vpop.xlane.xlu1 %91 }
 0x13a   :  { %v197_v15 = vpop.eup %196 }
 0x13b   :  { %v81_v16 = vmul.f32 0.6931472, %v197_v15 }
 0x13d   :  { %v82_v17 = vadd.f32 %v81_v16, %v73_v4 }
 0x13f   :  { %v180_v18 = vadd.f32 -1.0, %v82_v17  ;;  %v93_v22 = vsub.f32 %v82_v17, %v92_v19 }
 0x141   :  { %v95_v20 = vmax.f32 %v180_v18, 0.0 }
 0x143   :  { %v97_v21 = vmul.f32 %v95_v20, %v95_v20 }
 0x145   :  { %v98_v25 = vadd.f32 %v97_v21, %v93_v22 }
 0x147   :  { %v99_v26 = vmul.f32 %v179_v24, %v98_v25 }
 0x149   :  { %v101_v27 = vsel %vm100_vm3, %v99_v26, 0.0 }
 0x14a   :  { %102 = vadd.xlane.f32.xlu1 %v101_v27 }
 0x1d7   :  { %v103_v28 = vpop.xlane.xlu1 %102 }
 0x1d8   :  { %v104_v29 = vrot.slane %v103_v28, 4 }
 0x1da   :  { %v105_v30 = vadd.f32 %v104_v29, %v103_v28 }
 0x1dc   :  { %v106_v31 = vrot.slane %v105_v30, 2 }
 0x1de   :  { %v107_v32 = vadd.f32 %v106_v31, %v105_v30 }
 0x1e0   :  { %v108_v33 = vrot.slane %v107_v32, 1 }
 0x1e2   :  { %v109_v34 = vadd.f32 %v108_v33, %v107_v32 }
 0x1e4   :  { %184 = vpush %v109_v34 }
 0x215   :  { %s185_s2 = spop %184 }
 0x216   :  { %s111_s3 = sadd.f32 %s185_s2, %s96_s0 }
 0x218   :  { %113 = sst [smem:[#allocation5]] %s111_s3 }
 0x219 PF:  { %p181_p1 = scmp.le.s32.totalorder %s284_s1, 0 }
 0x21a   :  { %vm121_vm4 = vcmask (!%p181_p1), 261120   ;;  %vm118_vm5 = vcmp.lt.s32.totalorder (!%p181_p1), %v247_v0, 0  ;;  %v217_v47 = vmov (!%p181_p1), 0.0   ;;  %vm139_vm6 = vcmask (!%p181_p1), 7168   ;;  %s183_s1 = sld [smem:[#allocation5 + $0x1]] (!%p181_p1) }
 0x21b   :  { %117 = sbr.rel (%p181_p1) target bundleno = 1069 (0x42d), region = 21  ;;  %v122_v35 = vsel (!%p181_p1), %vm121_vm4, %v252_v1, inf  ;;  %v182_v48 = vsel (!%p181_p1), %vm118_vm5, 1.0, %v217_v47 }
 0x21c   :  { %123 = vmin.xlane.f32.xlu0 (!%p181_p1), %v122_v35 }
 0x2a9   :  { %v124_v36 = vpop.xlane.xlu0 %123 }
 0x2aa   :  { %v126_v37 = vsub.f32 %v124_v36, %v252_v1  ;;  %v125_v43 = vsub.f32 1.0, %v124_v36 }
 0x2ac   :  { %v127_v38 = vmul.f32 1.442695, %v126_v37 }
 0x2ae   :  { %198 = vpow2.f32 %v127_v38 }
 0x2b8   :  { %v199_v39 = vpop.eup %198 }
 0x2b9   :  { %v129_v40 = vsel %vm121_vm4, %v199_v39, 0.0 }
 0x2ba   :  { %130 = vadd.xlane.f32.xlu0 %v129_v40 }
 0x347   :  { %v131_v41 = vpop.xlane.xlu0 %130 }
 0x348   :  { %200 = vlog2.f32 %v131_v41 }
 0x352   :  { %v201_v42 = vpop.eup %200 }
 0x353   :  { %v133_v44 = vmul.f32 0.6931472, %v201_v42 }
 0x355   :  { %v134_v45 = vadd.f32 %v133_v44, %v125_v43 }
 0x357   :  { %v135_v46 = vmax.f32 %v134_v45, 0.0 }
 0x359   :  { %v137_v49 = vmul.f32 %v135_v46, %v135_v46 }
 0x35b   :  { %v138_v50 = vmul.f32 %v182_v48, %v137_v49 }
 0x35d   :  { %v140_v51 = vsel %vm139_vm6, %v138_v50, 0.0 }
 0x35e   :  { %141 = vadd.xlane.f32.xlu1 %v140_v51 }
 0x3eb   :  { %v142_v52 = vpop.xlane.xlu1 %141 }
 0x3ec   :  { %v143_v53 = vrot.slane %v142_v52, 4 }
 0x3ee   :  { %v144_v54 = vadd.f32 %v143_v53, %v142_v52 }
 0x3f0   :  { %v145_v55 = vrot.slane %v144_v54, 2 }
 0x3f2   :  { %v146_v56 = vadd.f32 %v145_v55, %v144_v54 }
 0x3f4   :  { %v147_v57 = vrot.slane %v146_v56, 1 }
 0x3f6   :  { %v148_v58 = vadd.f32 %v147_v57, %v146_v56 }
 0x3f8   :  { %186 = vpush %v148_v58 }
 0x429   :  { %s187_s24 = spop %186 }
 0x42a   :  { %s150_s25 = sadd.f32 %s187_s24, %s183_s1 }
 0x42c   :  { %152 = sst [smem:[#allocation5 + $0x1]] %s150_s25 }
 0x42d PF:  { %s202_s28 = scalar_lea.hbm %s287_s4, 16 }
 0x42e   :  { %p203_p2 = scmp.ne.s32.totalorder %s287_s4, %s202_s28  ;;  %p206_p3 = scmp.lt.u32.totalorder %s202_s28, %s287_s4 }
 0x430   :  { %p208_p4 = pnand %p206_p3, %p203_p2 }
 0x432   :  { %211 = shalt.err (!%p208_p4)
}
 0x433   :  { %s218_s7 = smov [#allocation5]  }
 0x434   :  { %160 = dma.smem_to_hbm %s218_s7, 16, %s287_s4, [#allocation6]  }
 0x435   :  { %212 = dma.done.wait [#allocation6], 16  }
 0x436   :  { %213 = vsyncadd [#allocation6], 4294967280 }
 0x437   :  { %164 = sfence }
 0x438   :  { %165 = vsyncpa [#allocation6], 1 }

</bundles_post_ra>
